<compile_context>
chip_gen: v7x
topology: tpu7x:2x2x1
jax: 0.10.0
libtpu: 0.0.40
codegen_flags: <defaults>
</compile_context>

<pallas_src>
import functools

import jax
import jax.numpy as jnp
from jax import lax
from jax.experimental import pallas as pl
from jax.experimental.pallas import tpu as pltpu  # noqa: F401  (kept for scratch variants)


def _gru_kernel(x_ref, wih_ref, bx_ref, whh_ref, bhn_ref,
                wfc_ref, bfc_ref, gamma_ref, beta_ref,
                o_ref, *, T, B, H, eps):
    # ---- 1) Fused input projection: all timesteps, all 3 gates, one matmul.
    #         Kept as a value (review item: drop the xp VMEM round-trip).
    #         b_hh_r / b_hh_z are already folded into bx by the wrapper.
    xp = (jnp.dot(x_ref[...], wih_ref[...], preferred_element_type=jnp.float32)
          + bx_ref[...])                                    # (T*B, 3H)
    # Per-gate lane slices hoisted out of the recurrence (3 slices total,
    # not 3 per step).
    xp_r = xp[:, 0 * H:1 * H]
    xp_z = xp[:, 1 * H:2 * H]
    xp_n = xp[:, 2 * H:3 * H]

    whh = whh_ref[...]                                      # (H, 3H), (in, out)
    # Hoist the b_hn broadcast out of the unrolled loop (JAX does not CSE
    # broadcast_in_dim).
    bhn = jnp.broadcast_to(bhn_ref[...], (B, H))            # (B, H)

    # ---- 2) Sequential GRU recurrence (PyTorch gate order r, z, n).
    #         Hidden state and per-step outputs carried as values; no scratch.
    h = jnp.zeros((B, H), jnp.float32)
    hs = []
    for t in range(T):                                      # T static & small -> unrolled
        lo, hi = t * B, (t + 1) * B                         # sublane-aligned rows (B=8)
        hp = jnp.dot(h, whh, preferred_element_type=jnp.float32)   # (B, 3H)
        r = jax.nn.sigmoid(xp_r[lo:hi] + hp[:, 0 * H:1 * H])
        z = jax.nn.sigmoid(xp_z[lo:hi] + hp[:, 1 * H:2 * H])
        n = jnp.tanh(xp_n[lo:hi] + r * (hp[:, 2 * H:3 * H] + bhn))
        h = (1.0 - z) * n + z * h
        hs.append(h)
    hseq = jnp.concatenate(hs, axis=0)                      # (T*B, H), time-major

    # ---- 3) Linear over the whole sequence: one matmul.
    y = (jnp.dot(hseq, wfc_ref[...], preferred_element_type=jnp.float32)
         + bfc_ref[...])                                    # (T*B, N)

    # ---- 4) BatchNorm1d over channels (training-mode batch stats, biased var).
    #         Channels live on the lane axis -> the PyTorch permutes vanish.
    mean = jnp.mean(y, axis=0, keepdims=True)
    ctr = y - mean
    var = jnp.mean(ctr * ctr, axis=0, keepdims=True)
    inv = lax.rsqrt(var + eps)
    o_ref[...] = (gamma_ref[...] * (ctr * inv) + beta_ref[...]).astype(o_ref.dtype)


def gru_forward(x, wih, bih, whh, bhh, wfc, bfc, gamma, beta, eps=1e-5):
    """x: (B, T, N).  Parameters in PyTorch layout:
       wih (3H, N), whh (3H, H), bih/bhh (3H,), wfc (N, H), bfc (N,),
       gamma/beta (N,)."""
    B, T, N = x.shape
    H = whh.shape[1]

    # One-time glue (outside the kernel): time-major flatten, (in, out) weights,
    # and bias folding (b_hh_r, b_hh_z merged into the input-projection bias).
    x_tb = jnp.transpose(x, (1, 0, 2)).reshape(T * B, N)
    wih_t, whh_t, wfc_t = wih.T, whh.T, wfc.T
    bx = bih + jnp.concatenate([bhh[:2 * H], jnp.zeros((H,), bhh.dtype)])
    bx2 = bx.reshape(1, 3 * H)
    bhn2 = bhh[2 * H:3 * H].reshape(1, H)
    bfc2, g2, b2 = bfc.reshape(1, N), gamma.reshape(1, N), beta.reshape(1, N)

    full2d = lambda shape: pl.BlockSpec(shape, lambda: (0, 0))

    out2d = pl.pallas_call(
        functools.partial(_gru_kernel, T=T, B=B, H=H, eps=eps),
        out_shape=jax.ShapeDtypeStruct((T * B, N), x.dtype),
        grid=(),
        in_specs=[
            full2d((T * B, N)),      # x (time-major)
            full2d((N, 3 * H)),      # W_ih^T
            full2d((1, 3 * H)),      # b_ih + [b_hr, b_hz, 0]
            full2d((H, 3 * H)),      # W_hh^T
            full2d((1, H)),          # b_hn
            full2d((H, N)),          # W_fc^T
            full2d((1, N)),          # b_fc
            full2d((1, N)),          # bn gamma
            full2d((1, N)),          # bn beta
        ],
        out_specs=full2d((T * B, N)),
    )(x_tb, wih_t, bx2, whh_t, bhn2, wfc_t, bfc2, g2, b2)

    return jnp.transpose(out2d.reshape(T, B, N), (1, 0, 2))    # (B, T, N)


def _reference(x, wih, bih, whh, bhh, wfc, bfc, gamma, beta, eps=1e-5):
    B, T, N = x.shape
    H = whh.shape[1]

    def cell(h, x_t):
        xp = x_t @ wih.T + bih
        hp = h @ whh.T + bhh
        xr, xz, xn = jnp.split(xp, 3, axis=-1)
        hr, hz, hn = jnp.split(hp, 3, axis=-1)
        r = jax.nn.sigmoid(xr + hr)
        z = jax.nn.sigmoid(xz + hz)
        n = jnp.tanh(xn + r * hn)
        h_new = (1.0 - z) * n + z * h
        return h_new, h_new

    xs = jnp.transpose(x, (1, 0, 2))                               # (T, B, N)
    _, hs = lax.scan(cell, jnp.zeros((B, H), jnp.float32), xs)     # (T, B, H)
    y = hs @ wfc.T + bfc                                           # (T, B, N)
    mean = y.mean(axis=(0, 1), keepdims=True)
    var = ((y - mean) ** 2).mean(axis=(0, 1), keepdims=True)
    out = gamma * ((y - mean) * lax.rsqrt(var + eps)) + beta
    return jnp.transpose(out, (1, 0, 2))                           # (B, T, N)


if __name__ == "__main__":
    batch, seq_len, num_nodes, hidden = 8, 8, 16, 32

    key = jax.random.PRNGKey(0)
    kx, k1, k2, k3, k4, k5, k6 = jax.random.split(key, 7)

    x = jax.random.normal(kx, (batch, seq_len, num_nodes), dtype=jnp.float32)

    bnd = 1.0 / (hidden ** 0.5)     # PyTorch GRU / Linear init bound
    wih = jax.random.uniform(k1, (3 * hidden, num_nodes), minval=-bnd, maxval=bnd, dtype=jnp.float32)
    whh = jax.random.uniform(k2, (3 * hidden, hidden),    minval=-bnd, maxval=bnd, dtype=jnp.float32)
    bih = jax.random.uniform(k3, (3 * hidden,), minval=-bnd, maxval=bnd, dtype=jnp.float32)
    bhh = jax.random.uniform(k4, (3 * hidden,), minval=-bnd, maxval=bnd, dtype=jnp.float32)
    wfc = jax.random.uniform(k5, (num_nodes, hidden), minval=-bnd, maxval=bnd, dtype=jnp.float32)
    bfc = jax.random.uniform(k6, (num_nodes,), minval=-bnd, maxval=bnd, dtype=jnp.float32)
    gamma = jnp.ones((num_nodes,), jnp.float32)    # BatchNorm1d default init
    beta = jnp.zeros((num_nodes,), jnp.float32)

    out = gru_forward(x, wih, bih, whh, bhh, wfc, bfc, gamma, beta)
    out = jax.block_until_ready(out)

    ref = _reference(x, wih, bih, whh, bhh, wfc, bfc, gamma, beta)
    assert out.shape == (batch, seq_len, num_nodes)
    assert jnp.allclose(out, ref, atol=1e-4, rtol=1e-4), "mismatch vs reference"

    print("KERNEL_OK")
</pallas_src>

<mosaic_0001>
module attributes {stable_mosaic.version = 11 : i64} {
  func.func @_gru_kernel(%arg0: memref<64x16xf32, #tpu.memory_space<vmem>>, %arg1: memref<16x96xf32, #tpu.memory_space<vmem>>, %arg2: memref<1x96xf32, #tpu.memory_space<vmem>>, %arg3: memref<32x96xf32, #tpu.memory_space<vmem>>, %arg4: memref<1x32xf32, #tpu.memory_space<vmem>>, %arg5: memref<32x16xf32, #tpu.memory_space<vmem>>, %arg6: memref<1x16xf32, #tpu.memory_space<vmem>>, %arg7: memref<1x16xf32, #tpu.memory_space<vmem>>, %arg8: memref<1x16xf32, #tpu.memory_space<vmem>>, %arg9: memref<64x16xf32, #tpu.memory_space<vmem>>) attributes {dimension_semantics = [], scalar_prefetch = 0 : i64, scratch_operands = 0 : i64, tpu.core_type = #tpu.core_type<tc>} {
    %c0 = arith.constant 0 : index
    %c0_0 = arith.constant 0 : index
    %0 = vector.load %arg0[%c0, %c0_0] : memref<64x16xf32, #tpu.memory_space<vmem>>, vector<64x16xf32>
    %c0_1 = arith.constant 0 : index
    %c0_2 = arith.constant 0 : index
    %1 = vector.load %arg1[%c0_1, %c0_2] : memref<16x96xf32, #tpu.memory_space<vmem>>, vector<16x96xf32>
    %cst = arith.constant dense<0.000000e+00> : vector<64x96xf32>
    %2 = tpu.matmul %0, %1, %cst {dimension_numbers = #tpu.dot_dimension_numbers<[1], [0], [0], [1], [0, 0, 1, 1], [], []>} : vector<64x16xf32>, vector<16x96xf32>, vector<64x96xf32> -> vector<64x96xf32>
    %c0_3 = arith.constant 0 : index
    %c0_4 = arith.constant 0 : index
    %3 = vector.load %arg2[%c0_3, %c0_4] : memref<1x96xf32, #tpu.memory_space<vmem>>, vector<1x96xf32>
    %4 = vector.broadcast %3 : vector<1x96xf32> to vector<64x96xf32>
    %5 = arith.addf %2, %4 : vector<64x96xf32>
    %6 = vector.extract_strided_slice %5 {offsets = [0, 0], sizes = [64, 32], strides = [1, 1]} : vector<64x96xf32> to vector<64x32xf32>
    %7 = vector.extract_strided_slice %5 {offsets = [0, 32], sizes = [64, 32], strides = [1, 1]} : vector<64x96xf32> to vector<64x32xf32>
    %8 = vector.extract_strided_slice %5 {offsets = [0, 64], sizes = [64, 32], strides = [1, 1]} : vector<64x96xf32> to vector<64x32xf32>
    %c0_5 = arith.constant 0 : index
    %c0_6 = arith.constant 0 : index
    %9 = vector.load %arg3[%c0_5, %c0_6] : memref<32x96xf32, #tpu.memory_space<vmem>>, vector<32x96xf32>
    %c0_7 = arith.constant 0 : index
    %c0_8 = arith.constant 0 : index
    %10 = vector.load %arg4[%c0_7, %c0_8] : memref<1x32xf32, #tpu.memory_space<vmem>>, vector<1x32xf32>
    %11 = vector.shape_cast %10 : vector<1x32xf32> to vector<1x32xf32>
    %12 = vector.broadcast %11 : vector<1x32xf32> to vector<8x32xf32>
    %cst_9 = arith.constant 0.000000e+00 : f32
    %13 = vector.broadcast %cst_9 : f32 to vector<8x32xf32>
    %cst_10 = arith.constant dense<0.000000e+00> : vector<8x96xf32>
    %14 = tpu.matmul %13, %9, %cst_10 {dimension_numbers = #tpu.dot_dimension_numbers<[1], [0], [0], [1], [0, 0, 1, 1], [], []>} : vector<8x32xf32>, vector<32x96xf32>, vector<8x96xf32> -> vector<8x96xf32>
    %15 = vector.extract_strided_slice %6 {offsets = [0, 0], sizes = [8, 32], strides = [1, 1]} : vector<64x32xf32> to vector<8x32xf32>
    %16 = vector.extract_strided_slice %14 {offsets = [0, 0], sizes = [8, 32], strides = [1, 1]} : vector<8x96xf32> to vector<8x32xf32>
    %17 = arith.addf %15, %16 : vector<8x32xf32>
    %18 = arith.negf %17 : vector<8x32xf32>
    %19 = math.exp %18 : vector<8x32xf32>
    %cst_11 = arith.constant 1.000000e+00 : f32
    %20 = vector.broadcast %cst_11 : f32 to vector<8x32xf32>
    %21 = arith.addf %20, %19 : vector<8x32xf32>
    %22 = arith.divf %20, %21 : vector<8x32xf32>
    %23 = vector.extract_strided_slice %7 {offsets = [0, 0], sizes = [8, 32], strides = [1, 1]} : vector<64x32xf32> to vector<8x32xf32>
    %24 = vector.extract_strided_slice %14 {offsets = [0, 32], sizes = [8, 32], strides = [1, 1]} : vector<8x96xf32> to vector<8x32xf32>
    %25 = arith.addf %23, %24 : vector<8x32xf32>
    %26 = arith.negf %25 : vector<8x32xf32>
    %27 = math.exp %26 : vector<8x32xf32>
    %cst_12 = arith.constant 1.000000e+00 : f32
    %28 = vector.broadcast %cst_12 : f32 to vector<8x32xf32>
    %29 = arith.addf %28, %27 : vector<8x32xf32>
    %30 = arith.divf %28, %29 : vector<8x32xf32>
    %31 = vector.extract_strided_slice %8 {offsets = [0, 0], sizes = [8, 32], strides = [1, 1]} : vector<64x32xf32> to vector<8x32xf32>
    %32 = vector.extract_strided_slice %14 {offsets = [0, 64], sizes = [8, 32], strides = [1, 1]} : vector<8x96xf32> to vector<8x32xf32>
    %33 = arith.addf %32, %12 : vector<8x32xf32>
    %34 = arith.mulf %22, %33 : vector<8x32xf32>
    %35 = arith.addf %31, %34 : vector<8x32xf32>
    %36 = math.tanh %35 : vector<8x32xf32>
    %cst_13 = arith.constant 1.000000e+00 : f32
    %37 = vector.broadcast %cst_13 : f32 to vector<8x32xf32>
    %38 = arith.subf %37, %30 : vector<8x32xf32>
    %39 = arith.mulf %38, %36 : vector<8x32xf32>
    %40 = arith.mulf %30, %13 : vector<8x32xf32>
    %41 = arith.addf %39, %40 : vector<8x32xf32>
    %cst_14 = arith.constant dense<0.000000e+00> : vector<8x96xf32>
    %42 = tpu.matmul %41, %9, %cst_14 {dimension_numbers = #tpu.dot_dimension_numbers<[1], [0], [0], [1], [0, 0, 1, 1], [], []>} : vector<8x32xf32>, vector<32x96xf32>, vector<8x96xf32> -> vector<8x96xf32>
    %43 = vector.extract_strided_slice %6 {offsets = [8, 0], sizes = [8, 32], strides = [1, 1]} : vector<64x32xf32> to vector<8x32xf32>
    %44 = vector.extract_strided_slice %42 {offsets = [0, 0], sizes = [8, 32], strides = [1, 1]} : vector<8x96xf32> to vector<8x32xf32>
    %45 = arith.addf %43, %44 : vector<8x32xf32>
    %46 = arith.negf %45 : vector<8x32xf32>
    %47 = math.exp %46 : vector<8x32xf32>
    %cst_15 = arith.constant 1.000000e+00 : f32
    %48 = vector.broadcast %cst_15 : f32 to vector<8x32xf32>
    %49 = arith.addf %48, %47 : vector<8x32xf32>
    %50 = arith.divf %48, %49 : vector<8x32xf32>
    %51 = vector.extract_strided_slice %7 {offsets = [8, 0], sizes = [8, 32], strides = [1, 1]} : vector<64x32xf32> to vector<8x32xf32>
    %52 = vector.extract_strided_slice %42 {offsets = [0, 32], sizes = [8, 32], strides = [1, 1]} : vector<8x96xf32> to vector<8x32xf32>
    %53 = arith.addf %51, %52 : vector<8x32xf32>
    %54 = arith.negf %53 : vector<8x32xf32>
    %55 = math.exp %54 : vector<8x32xf32>
    %cst_16 = arith.constant 1.000000e+00 : f32
    %56 = vector.broadcast %cst_16 : f32 to vector<8x32xf32>
    %57 = arith.addf %56, %55 : vector<8x32xf32>
    %58 = arith.divf %56, %57 : vector<8x32xf32>
    %59 = vector.extract_strided_slice %8 {offsets = [8, 0], sizes = [8, 32], strides = [1, 1]} : vector<64x32xf32> to vector<8x32xf32>
    %60 = vector.extract_strided_slice %42 {offsets = [0, 64], sizes = [8, 32], strides = [1, 1]} : vector<8x96xf32> to vector<8x32xf32>
    %61 = arith.addf %60, %12 : vector<8x32xf32>
    %62 = arith.mulf %50, %61 : vector<8x32xf32>
    %63 = arith.addf %59, %62 : vector<8x32xf32>
    %64 = math.tanh %63 : vector<8x32xf32>
    %cst_17 = arith.constant 1.000000e+00 : f32
    %65 = vector.broadcast %cst_17 : f32 to vector<8x32xf32>
    %66 = arith.subf %65, %58 : vector<8x32xf32>
    %67 = arith.mulf %66, %64 : vector<8x32xf32>
    %68 = arith.mulf %58, %41 : vector<8x32xf32>
    %69 = arith.addf %67, %68 : vector<8x32xf32>
    %cst_18 = arith.constant dense<0.000000e+00> : vector<8x96xf32>
    %70 = tpu.matmul %69, %9, %cst_18 {dimension_numbers = #tpu.dot_dimension_numbers<[1], [0], [0], [1], [0, 0, 1, 1], [], []>} : vector<8x32xf32>, vector<32x96xf32>, vector<8x96xf32> -> vector<8x96xf32>
    %71 = vector.extract_strided_slice %6 {offsets = [16, 0], sizes = [8, 32], strides = [1, 1]} : vector<64x32xf32> to vector<8x32xf32>
    %72 = vector.extract_strided_slice %70 {offsets = [0, 0], sizes = [8, 32], strides = [1, 1]} : vector<8x96xf32> to vector<8x32xf32>
    %73 = arith.addf %71, %72 : vector<8x32xf32>
    %74 = arith.negf %73 : vector<8x32xf32>
    %75 = math.exp %74 : vector<8x32xf32>
    %cst_19 = arith.constant 1.000000e+00 : f32
    %76 = vector.broadcast %cst_19 : f32 to vector<8x32xf32>
    %77 = arith.addf %76, %75 : vector<8x32xf32>
    %78 = arith.divf %76, %77 : vector<8x32xf32>
    %79 = vector.extract_strided_slice %7 {offsets = [16, 0], sizes = [8, 32], strides = [1, 1]} : vector<64x32xf32> to vector<8x32xf32>
    %80 = vector.extract_strided_slice %70 {offsets = [0, 32], sizes = [8, 32], strides = [1, 1]} : vector<8x96xf32> to vector<8x32xf32>
    %81 = arith.addf %79, %80 : vector<8x32xf32>
    %82 = arith.negf %81 : vector<8x32xf32>
    %83 = math.exp %82 : vector<8x32xf32>
    %cst_20 = arith.constant 1.000000e+00 : f32
    %84 = vector.broadcast %cst_20 : f32 to vector<8x32xf32>
    %85 = arith.addf %84, %83 : vector<8x32xf32>
    %86 = arith.divf %84, %85 : vector<8x32xf32>
    %87 = vector.extract_strided_slice %8 {offsets = [16, 0], sizes = [8, 32], strides = [1, 1]} : vector<64x32xf32> to vector<8x32xf32>
    %88 = vector.extract_strided_slice %70 {offsets = [0, 64], sizes = [8, 32], strides = [1, 1]} : vector<8x96xf32> to vector<8x32xf32>
    %89 = arith.addf %88, %12 : vector<8x32xf32>
    %90 = arith.mulf %78, %89 : vector<8x32xf32>
    %91 = arith.addf %87, %90 : vector<8x32xf32>
    %92 = math.tanh %91 : vector<8x32xf32>
    %cst_21 = arith.constant 1.000000e+00 : f32
    %93 = vector.broadcast %cst_21 : f32 to vector<8x32xf32>
    %94 = arith.subf %93, %86 : vector<8x32xf32>
    %95 = arith.mulf %94, %92 : vector<8x32xf32>
    %96 = arith.mulf %86, %69 : vector<8x32xf32>
    %97 = arith.addf %95, %96 : vector<8x32xf32>
    %cst_22 = arith.constant dense<0.000000e+00> : vector<8x96xf32>
    %98 = tpu.matmul %97, %9, %cst_22 {dimension_numbers = #tpu.dot_dimension_numbers<[1], [0], [0], [1], [0, 0, 1, 1], [], []>} : vector<8x32xf32>, vector<32x96xf32>, vector<8x96xf32> -> vector<8x96xf32>
    %99 = vector.extract_strided_slice %6 {offsets = [24, 0], sizes = [8, 32], strides = [1, 1]} : vector<64x32xf32> to vector<8x32xf32>
    %100 = vector.extract_strided_slice %98 {offsets = [0, 0], sizes = [8, 32], strides = [1, 1]} : vector<8x96xf32> to vector<8x32xf32>
    %101 = arith.addf %99, %100 : vector<8x32xf32>
    %102 = arith.negf %101 : vector<8x32xf32>
    %103 = math.exp %102 : vector<8x32xf32>
    %cst_23 = arith.constant 1.000000e+00 : f32
    %104 = vector.broadcast %cst_23 : f32 to vector<8x32xf32>
    %105 = arith.addf %104, %103 : vector<8x32xf32>
    %106 = arith.divf %104, %105 : vector<8x32xf32>
    %107 = vector.extract_strided_slice %7 {offsets = [24, 0], sizes = [8, 32], strides = [1, 1]} : vector<64x32xf32> to vector<8x32xf32>
    %108 = vector.extract_strided_slice %98 {offsets = [0, 32], sizes = [8, 32], strides = [1, 1]} : vector<8x96xf32> to vector<8x32xf32>
    %109 = arith.addf %107, %108 : vector<8x32xf32>
    %110 = arith.negf %109 : vector<8x32xf32>
    %111 = math.exp %110 : vector<8x32xf32>
    %cst_24 = arith.constant 1.000000e+00 : f32
    %112 = vector.broadcast %cst_24 : f32 to vector<8x32xf32>
    %113 = arith.addf %112, %111 : vector<8x32xf32>
    %114 = arith.divf %112, %113 : vector<8x32xf32>
    %115 = vector.extract_strided_slice %8 {offsets = [24, 0], sizes = [8, 32], strides = [1, 1]} : vector<64x32xf32> to vector<8x32xf32>
    %116 = vector.extract_strided_slice %98 {offsets = [0, 64], sizes = [8, 32], strides = [1, 1]} : vector<8x96xf32> to vector<8x32xf32>
    %117 = arith.addf %116, %12 : vector<8x32xf32>
    %118 = arith.mulf %106, %117 : vector<8x32xf32>
    %119 = arith.addf %115, %118 : vector<8x32xf32>
    %120 = math.tanh %119 : vector<8x32xf32>
    %cst_25 = arith.constant 1.000000e+00 : f32
    %121 = vector.broadcast %cst_25 : f32 to vector<8x32xf32>
    %122 = arith.subf %121, %114 : vector<8x32xf32>
    %123 = arith.mulf %122, %120 : vector<8x32xf32>
    %124 = arith.mulf %114, %97 : vector<8x32xf32>
    %125 = arith.addf %123, %124 : vector<8x32xf32>
    %cst_26 = arith.constant dense<0.000000e+00> : vector<8x96xf32>
    %126 = tpu.matmul %125, %9, %cst_26 {dimension_numbers = #tpu.dot_dimension_numbers<[1], [0], [0], [1], [0, 0, 1, 1], [], []>} : vector<8x32xf32>, vector<32x96xf32>, vector<8x96xf32> -> vector<8x96xf32>
    %127 = vector.extract_strided_slice %6 {offsets = [32, 0], sizes = [8, 32], strides = [1, 1]} : vector<64x32xf32> to vector<8x32xf32>
    %128 = vector.extract_strided_slice %126 {offsets = [0, 0], sizes = [8, 32], strides = [1, 1]} : vector<8x96xf32> to vector<8x32xf32>
    %129 = arith.addf %127, %128 : vector<8x32xf32>
    %130 = arith.negf %129 : vector<8x32xf32>
    %131 = math.exp %130 : vector<8x32xf32>
    %cst_27 = arith.constant 1.000000e+00 : f32
    %132 = vector.broadcast %cst_27 : f32 to vector<8x32xf32>
    %133 = arith.addf %132, %131 : vector<8x32xf32>
    %134 = arith.divf %132, %133 : vector<8x32xf32>
    %135 = vector.extract_strided_slice %7 {offsets = [32, 0], sizes = [8, 32], strides = [1, 1]} : vector<64x32xf32> to vector<8x32xf32>
    %136 = vector.extract_strided_slice %126 {offsets = [0, 32], sizes = [8, 32], strides = [1, 1]} : vector<8x96xf32> to vector<8x32xf32>
    %137 = arith.addf %135, %136 : vector<8x32xf32>
    %138 = arith.negf %137 : vector<8x32xf32>
    %139 = math.exp %138 : vector<8x32xf32>
    %cst_28 = arith.constant 1.000000e+00 : f32
    %140 = vector.broadcast %cst_28 : f32 to vector<8x32xf32>
    %141 = arith.addf %140, %139 : vector<8x32xf32>
    %142 = arith.divf %140, %141 : vector<8x32xf32>
    %143 = vector.extract_strided_slice %8 {offsets = [32, 0], sizes = [8, 32], strides = [1, 1]} : vector<64x32xf32> to vector<8x32xf32>
    %144 = vector.extract_strided_slice %126 {offsets = [0, 64], sizes = [8, 32], strides = [1, 1]} : vector<8x96xf32> to vector<8x32xf32>
    %145 = arith.addf %144, %12 : vector<8x32xf32>
    %146 = arith.mulf %134, %145 : vector<8x32xf32>
    %147 = arith.addf %143, %146 : vector<8x32xf32>
    %148 = math.tanh %147 : vector<8x32xf32>
    %cst_29 = arith.constant 1.000000e+00 : f32
    %149 = vector.broadcast %cst_29 : f32 to vector<8x32xf32>
    %150 = arith.subf %149, %142 : vector<8x32xf32>
    %151 = arith.mulf %150, %148 : vector<8x32xf32>
    %152 = arith.mulf %142, %125 : vector<8x32xf32>
    %153 = arith.addf %151, %152 : vector<8x32xf32>
    %cst_30 = arith.constant dense<0.000000e+00> : vector<8x96xf32>
    %154 = tpu.matmul %153, %9, %cst_30 {dimension_numbers = #tpu.dot_dimension_numbers<[1], [0], [0], [1], [0, 0, 1, 1], [], []>} : vector<8x32xf32>, vector<32x96xf32>, vector<8x96xf32> -> vector<8x96xf32>
    %155 = vector.extract_strided_slice %6 {offsets = [40, 0], sizes = [8, 32], strides = [1, 1]} : vector<64x32xf32> to vector<8x32xf32>
    %156 = vector.extract_strided_slice %154 {offsets = [0, 0], sizes = [8, 32], strides = [1, 1]} : vector<8x96xf32> to vector<8x32xf32>
    %157 = arith.addf %155, %156 : vector<8x32xf32>
    %158 = arith.negf %157 : vector<8x32xf32>
    %159 = math.exp %158 : vector<8x32xf32>
    %cst_31 = arith.constant 1.000000e+00 : f32
    %160 = vector.broadcast %cst_31 : f32 to vector<8x32xf32>
    %161 = arith.addf %160, %159 : vector<8x32xf32>
    %162 = arith.divf %160, %161 : vector<8x32xf32>
    %163 = vector.extract_strided_slice %7 {offsets = [40, 0], sizes = [8, 32], strides = [1, 1]} : vector<64x32xf32> to vector<8x32xf32>
    %164 = vector.extract_strided_slice %154 {offsets = [0, 32], sizes = [8, 32], strides = [1, 1]} : vector<8x96xf32> to vector<8x32xf32>
    %165 = arith.addf %163, %164 : vector<8x32xf32>
    %166 = arith.negf %165 : vector<8x32xf32>
    %167 = math.exp %166 : vector<8x32xf32>
    %cst_32 = arith.constant 1.000000e+00 : f32
    %168 = vector.broadcast %cst_32 : f32 to vector<8x32xf32>
    %169 = arith.addf %168, %167 : vector<8x32xf32>
    %170 = arith.divf %168, %169 : vector<8x32xf32>
    %171 = vector.extract_strided_slice %8 {offsets = [40, 0], sizes = [8, 32], strides = [1, 1]} : vector<64x32xf32> to vector<8x32xf32>
    %172 = vector.extract_strided_slice %154 {offsets = [0, 64], sizes = [8, 32], strides = [1, 1]} : vector<8x96xf32> to vector<8x32xf32>
    %173 = arith.addf %172, %12 : vector<8x32xf32>
    %174 = arith.mulf %162, %173 : vector<8x32xf32>
    %175 = arith.addf %171, %174 : vector<8x32xf32>
    %176 = math.tanh %175 : vector<8x32xf32>
    %cst_33 = arith.constant 1.000000e+00 : f32
    %177 = vector.broadcast %cst_33 : f32 to vector<8x32xf32>
    %178 = arith.subf %177, %170 : vector<8x32xf32>
    %179 = arith.mulf %178, %176 : vector<8x32xf32>
    %180 = arith.mulf %170, %153 : vector<8x32xf32>
    %181 = arith.addf %179, %180 : vector<8x32xf32>
    %cst_34 = arith.constant dense<0.000000e+00> : vector<8x96xf32>
    %182 = tpu.matmul %181, %9, %cst_34 {dimension_numbers = #tpu.dot_dimension_numbers<[1], [0], [0], [1], [0, 0, 1, 1], [], []>} : vector<8x32xf32>, vector<32x96xf32>, vector<8x96xf32> -> vector<8x96xf32>
    %183 = vector.extract_strided_slice %6 {offsets = [48, 0], sizes = [8, 32], strides = [1, 1]} : vector<64x32xf32> to vector<8x32xf32>
    %184 = vector.extract_strided_slice %182 {offsets = [0, 0], sizes = [8, 32], strides = [1, 1]} : vector<8x96xf32> to vector<8x32xf32>
    %185 = arith.addf %183, %184 : vector<8x32xf32>
    %186 = arith.negf %185 : vector<8x32xf32>
    %187 = math.exp %186 : vector<8x32xf32>
    %cst_35 = arith.constant 1.000000e+00 : f32
    %188 = vector.broadcast %cst_35 : f32 to vector<8x32xf32>
    %189 = arith.addf %188, %187 : vector<8x32xf32>
    %190 = arith.divf %188, %189 : vector<8x32xf32>
    %191 = vector.extract_strided_slice %7 {offsets = [48, 0], sizes = [8, 32], strides = [1, 1]} : vector<64x32xf32> to vector<8x32xf32>
    %192 = vector.extract_strided_slice %182 {offsets = [0, 32], sizes = [8, 32], strides = [1, 1]} : vector<8x96xf32> to vector<8x32xf32>
    %193 = arith.addf %191, %192 : vector<8x32xf32>
    %194 = arith.negf %193 : vector<8x32xf32>
    %195 = math.exp %194 : vector<8x32xf32>
    %cst_36 = arith.constant 1.000000e+00 : f32
    %196 = vector.broadcast %cst_36 : f32 to vector<8x32xf32>
    %197 = arith.addf %196, %195 : vector<8x32xf32>
    %198 = arith.divf %196, %197 : vector<8x32xf32>
    %199 = vector.extract_strided_slice %8 {offsets = [48, 0], sizes = [8, 32], strides = [1, 1]} : vector<64x32xf32> to vector<8x32xf32>
    %200 = vector.extract_strided_slice %182 {offsets = [0, 64], sizes = [8, 32], strides = [1, 1]} : vector<8x96xf32> to vector<8x32xf32>
    %201 = arith.addf %200, %12 : vector<8x32xf32>
    %202 = arith.mulf %190, %201 : vector<8x32xf32>
    %203 = arith.addf %199, %202 : vector<8x32xf32>
    %204 = math.tanh %203 : vector<8x32xf32>
    %cst_37 = arith.constant 1.000000e+00 : f32
    %205 = vector.broadcast %cst_37 : f32 to vector<8x32xf32>
    %206 = arith.subf %205, %198 : vector<8x32xf32>
    %207 = arith.mulf %206, %204 : vector<8x32xf32>
    %208 = arith.mulf %198, %181 : vector<8x32xf32>
    %209 = arith.addf %207, %208 : vector<8x32xf32>
    %cst_38 = arith.constant dense<0.000000e+00> : vector<8x96xf32>
    %210 = tpu.matmul %209, %9, %cst_38 {dimension_numbers = #tpu.dot_dimension_numbers<[1], [0], [0], [1], [0, 0, 1, 1], [], []>} : vector<8x32xf32>, vector<32x96xf32>, vector<8x96xf32> -> vector<8x96xf32>
    %211 = vector.extract_strided_slice %6 {offsets = [56, 0], sizes = [8, 32], strides = [1, 1]} : vector<64x32xf32> to vector<8x32xf32>
    %212 = vector.extract_strided_slice %210 {offsets = [0, 0], sizes = [8, 32], strides = [1, 1]} : vector<8x96xf32> to vector<8x32xf32>
    %213 = arith.addf %211, %212 : vector<8x32xf32>
    %214 = arith.negf %213 : vector<8x32xf32>
    %215 = math.exp %214 : vector<8x32xf32>
    %cst_39 = arith.constant 1.000000e+00 : f32
    %216 = vector.broadcast %cst_39 : f32 to vector<8x32xf32>
    %217 = arith.addf %216, %215 : vector<8x32xf32>
    %218 = arith.divf %216, %217 : vector<8x32xf32>
    %219 = vector.extract_strided_slice %7 {offsets = [56, 0], sizes = [8, 32], strides = [1, 1]} : vector<64x32xf32> to vector<8x32xf32>
    %220 = vector.extract_strided_slice %210 {offsets = [0, 32], sizes = [8, 32], strides = [1, 1]} : vector<8x96xf32> to vector<8x32xf32>
    %221 = arith.addf %219, %220 : vector<8x32xf32>
    %222 = arith.negf %221 : vector<8x32xf32>
    %223 = math.exp %222 : vector<8x32xf32>
    %cst_40 = arith.constant 1.000000e+00 : f32
    %224 = vector.broadcast %cst_40 : f32 to vector<8x32xf32>
    %225 = arith.addf %224, %223 : vector<8x32xf32>
    %226 = arith.divf %224, %225 : vector<8x32xf32>
    %227 = vector.extract_strided_slice %8 {offsets = [56, 0], sizes = [8, 32], strides = [1, 1]} : vector<64x32xf32> to vector<8x32xf32>
    %228 = vector.extract_strided_slice %210 {offsets = [0, 64], sizes = [8, 32], strides = [1, 1]} : vector<8x96xf32> to vector<8x32xf32>
    %229 = arith.addf %228, %12 : vector<8x32xf32>
    %230 = arith.mulf %218, %229 : vector<8x32xf32>
    %231 = arith.addf %227, %230 : vector<8x32xf32>
    %232 = math.tanh %231 : vector<8x32xf32>
    %cst_41 = arith.constant 1.000000e+00 : f32
    %233 = vector.broadcast %cst_41 : f32 to vector<8x32xf32>
    %234 = arith.subf %233, %226 : vector<8x32xf32>
    %235 = arith.mulf %234, %232 : vector<8x32xf32>
    %236 = arith.mulf %226, %209 : vector<8x32xf32>
    %237 = arith.addf %235, %236 : vector<8x32xf32>
    %238 = tpu.concatenate %41, %69, %97, %125, %153, %181, %209, %237 in 0 : vector<8x32xf32>, vector<8x32xf32>, vector<8x32xf32>, vector<8x32xf32>, vector<8x32xf32>, vector<8x32xf32>, vector<8x32xf32>, vector<8x32xf32> -> vector<64x32xf32>
    %c0_42 = arith.constant 0 : index
    %c0_43 = arith.constant 0 : index
    %239 = vector.load %arg5[%c0_42, %c0_43] : memref<32x16xf32, #tpu.memory_space<vmem>>, vector<32x16xf32>
    %cst_44 = arith.constant dense<0.000000e+00> : vector<64x16xf32>
    %240 = tpu.matmul %238, %239, %cst_44 {dimension_numbers = #tpu.dot_dimension_numbers<[1], [0], [0], [1], [0, 0, 1, 1], [], []>} : vector<64x32xf32>, vector<32x16xf32>, vector<64x16xf32> -> vector<64x16xf32>
    %c0_45 = arith.constant 0 : index
    %c0_46 = arith.constant 0 : index
    %241 = vector.load %arg6[%c0_45, %c0_46] : memref<1x16xf32, #tpu.memory_space<vmem>>, vector<1x16xf32>
    %242 = vector.broadcast %241 : vector<1x16xf32> to vector<64x16xf32>
    %243 = arith.addf %240, %242 : vector<64x16xf32>
    %cst_47 = arith.constant dense<0.000000e+00> : vector<16xf32>
    %244 = vector.multi_reduction <add>, %243, %cst_47 [0] : vector<64x16xf32> to vector<16xf32>
    %245 = vector.shape_cast %244 : vector<16xf32> to vector<1x16xf32>
    %cst_48 = arith.constant 6.400000e+01 : f32
    %246 = vector.broadcast %cst_48 : f32 to vector<1x16xf32>
    %247 = arith.divf %245, %246 : vector<1x16xf32>
    %248 = vector.broadcast %247 : vector<1x16xf32> to vector<64x16xf32>
    %249 = arith.subf %243, %248 : vector<64x16xf32>
    %250 = arith.mulf %249, %249 : vector<64x16xf32>
    %cst_49 = arith.constant dense<0.000000e+00> : vector<16xf32>
    %251 = vector.multi_reduction <add>, %250, %cst_49 [0] : vector<64x16xf32> to vector<16xf32>
    %252 = vector.shape_cast %251 : vector<16xf32> to vector<1x16xf32>
    %cst_50 = arith.constant 6.400000e+01 : f32
    %253 = vector.broadcast %cst_50 : f32 to vector<1x16xf32>
    %254 = arith.divf %252, %253 : vector<1x16xf32>
    %cst_51 = arith.constant 9.99999974E-6 : f32
    %255 = vector.broadcast %cst_51 : f32 to vector<1x16xf32>
    %256 = arith.addf %254, %255 : vector<1x16xf32>
    %257 = math.rsqrt %256 : vector<1x16xf32>
    %c0_52 = arith.constant 0 : index
    %c0_53 = arith.constant 0 : index
    %258 = vector.load %arg7[%c0_52, %c0_53] : memref<1x16xf32, #tpu.memory_space<vmem>>, vector<1x16xf32>
    %259 = vector.broadcast %257 : vector<1x16xf32> to vector<64x16xf32>
    %260 = arith.mulf %249, %259 : vector<64x16xf32>
    %261 = vector.broadcast %258 : vector<1x16xf32> to vector<64x16xf32>
    %262 = arith.mulf %261, %260 : vector<64x16xf32>
    %c0_54 = arith.constant 0 : index
    %c0_55 = arith.constant 0 : index
    %263 = vector.load %arg8[%c0_54, %c0_55] : memref<1x16xf32, #tpu.memory_space<vmem>>, vector<1x16xf32>
    %264 = vector.broadcast %263 : vector<1x16xf32> to vector<64x16xf32>
    %265 = arith.addf %262, %264 : vector<64x16xf32>
    %c0_56 = arith.constant 0 : index
    %c0_57 = arith.constant 0 : index
    %266 = vector.load %arg9[%c0_56, %c0_57] : memref<64x16xf32, #tpu.memory_space<vmem>>, vector<64x16xf32>
    tpu.vector_store %arg9[%c0_56, %c0_57], %265 {strides = array<i32>} : memref<64x16xf32, #tpu.memory_space<vmem>>, vector<64x16xf32>,
    return
  }
}

</mosaic_0001>

<bundles_post_ra>
// kernel: tpu_custom_call.1
= control target key start
LH: loop header
LB: loop body
LE: loop exit
PB: predicated region body
PF: predicated region fallthrough
CT: control target
= control target key end

     0   :  { %vm49_vm0 = vcmask 130048   ;;  %v1580_v11 = vmov 0.0|0.0   ;;  %s1581_s11 = smov 64   ;;  %vm1582_vm1 = vmmov 0   ;;  %v1583_v17 = vmov 0.0   ;;  %s1584_s14 = smov 96   ;;  %s1947_s1 = inlined_call_operand.vmem [shape: f32[16,96], index: 1, kind: input, shape index: {}]   ;;  %s1948_s0 = inlined_call_operand.vmem [shape: f32[64,16], index: 0, kind: input, shape index: {}]   ;;  %s1949_s3 = inlined_call_operand.vmem [shape: f32[32,96], index: 3, kind: input, shape index: {}]   ;;  %s1950_s4 = inlined_call_operand.vmem [shape: f32[1,32], index: 4, kind: input, shape index: {}]   ;;  %s1951_s2 = inlined_call_operand.vmem [shape: f32[1,96], index: 2, kind: input, shape index: {}]   ;;  %s1952_s5 = inlined_call_operand.vmem [shape: f32[32,16], index: 5, kind: input, shape index: {}]   ;;  %s1953_s6 = inlined_call_operand.vmem [shape: f32[1,16], index: 6, kind: input, shape index: {}]   ;;  %s1954_s7 = inlined_call_operand.vmem [shape: f32[1,16], index: 7, kind: input, shape index: {}]   ;;  %s1955_s8 = inlined_call_operand.vmem [shape: f32[1,16], index: 8, kind: input, shape index: {}]   ;;  %s1956_s9 = inlined_call_operand.vmem [shape: f32[64,16], index: 9, kind: output, shape index: {}]  }
   0x1   :  { %v40_v0 = vld [vmem:[%s1947_s1] sm:$0xff]  ;;  %v41_v1 = vld [vmem:[%s1947_s1 + $0x8] sm:$0xff]  ;;  %v38_v12 = vld [vmem:[%s1948_s0 + $0x30] sm:$0xff]  ;;  %vm189_vm2 = vcmask 261120  }
   0x2   :  { %v36_v2 = vld [vmem:[%s1948_s0 + $0x20] sm:$0xff]  ;;  %v1463_v3 = vpack.c.bf16 %v41_v1, %v40_v0  ;;  %v180_v5 = vld [vmem:[%s1949_s3 + $0x8] sm:$0xff]  ;;  %v181_v13 = vld [vmem:[%s1949_s3 + $0x10] sm:$0xff] }
   0x3   :  { %1349 = vmatprep.mubr.msk.f32.mxu1 %vm49_vm0, %v36_v2  ;;  %v179_v4 = vld [vmem:[%s1949_s3] sm:$0xff]  ;;  %v37_v7 = vld [vmem:[%s1948_s0 + $0x28] sm:$0xff]  ;;  %v182_v14 = vld [vmem:[%s1949_s3 + $0x18] sm:$0xff] }
   0x4   :  { %v32_v6 = vld [vmem:[%s1948_s0] sm:$0xff]  ;;  %1523 = vmatprep.subr.bf16.mxu1 %v1463_v3  ;;  %1464 = vmatprep.subr.bf16.mxu0 %v1463_v3  ;;  %v1657_v8 = vpack.c.bf16 %v180_v5, %v179_v4  ;;  %v33_v9 = vld [vmem:[%s1948_s0 + $0x8] sm:$0xff]  ;;  %v39_v15 = vld [vmem:[%s1948_s0 + $0x38] sm:$0xff]  ;;  %v1685_v16 = vpack.c.bf16 %v182_v14, %v181_v13 }
   0x5   :  { %1524 = vmatpush3.bf16.msra.mxu1 %v1463_v3  ;;  %1466 = vmatpush3.bf16.msra.mxu0 %v1463_v3  ;;  %v1250_v10 = vld [vmem:[%s1950_s4] ss:$0 sm:$0xff]  ;;  %v34_v59 = vld [vmem:[%s1948_s0 + $0x10] sm:$0xff]  ;;  %v35_v60 = vld [vmem:[%s1948_s0 + $0x18] sm:$0xff] }
   0x6   :  { %1467 = vmatprep.subr.bf16.mxu1 %v1580_v11  ;;  %1343 = vmatprep.mubr.msk.f32.mxu0 %vm49_vm0, %v32_v6  ;;  %v1719_v28 = vld [vmem:[%s1951_s2] ss:$0 sm:$0xff] }
   0x7   :  { %270 = vrot.lane.b32.xlu0 %v1250_v10, %s1581_s11  ;;  %1479 = vmatprep.subr.bf16.mxu0 %v1580_v11 }
   0x8   :  { %1350 = vmatmul.mubr.msk.f32.vlgmr.msra.gmra.mrb[0].mxu1 %vm49_vm0, %v37_v7  ;;  %1344 = vmatmul.mubr.msk.f32.vlgmr.msra.gmra.mrb[0].mxu0 %vm49_vm0, %v33_v9 }
   0x9   :  { %1469 = vmatpush3.bf16.msra.mxu1 %v1657_v8  ;;  %1352 = vmatprep.mubr.msk.f32.mxu1 %vm49_vm0, %v38_v12 }
   0xa   :  { %1470 = vmatprep.subr.bf16.mxu1 %v1580_v11  ;;  %1481 = vmatpush3.bf16.msra.mxu0 %v1657_v8 }
   0xb   :  { %1482 = vmatprep.subr.bf16.mxu0 %v1580_v11  ;;  %1346 = vmatprep.mubr.msk.f32.mxu0 %vm49_vm0, %v34_v59 }
   0xc   :  { %1353 = vmatmul.mubr.msk.f32.gmra.mrb[2].mxu1 %vm49_vm0, %v39_v15  ;;  %1347 = vmatmul.mubr.msk.f32.gmra.mrb[2].mxu0 %vm49_vm0, %v35_v60 }
   0xd   :  { %1472 = vmatpush3.bf16.msra.mxu1 %v1685_v16  ;;  %1363 = vmatprep.mubr.msk.f32.mxu1 %vm1582_vm1, %v1583_v17 }
   0xe   :  { %1473 = vmatprep.subr.bf16.mxu1 %v1580_v11  ;;  %1484 = vmatpush3.bf16.msra.mxu0 %v1685_v16 }
   0xf   :  { %1491 = vmatprep.subr.bf16.mxu0 %v1580_v11  ;;  %1385 = vmatprep.mubr.msk.f32.mxu0 %vm1582_vm1, %v1583_v17 }
  0x10   :  { %1364 = vmatmul.mubr.f32.vlgmr.msra.gmra.mrb[4].mxu1 %v1583_v17 }
  0x11   :  { %1475 = vmatpush3.bf16.msra.mxu1 %v1657_v8  ;;  %1374 = vmatprep.mubr.msk.f32.mxu1 %vm1582_vm1, %v1583_v17 }
  0x12   :  { %1476 = vmatprep.subr.bf16.mxu1 %v1580_v11 }
  0x15   :  { %1478 = vmatpush3.bf16.msra.mxu1 %v1685_v16 }
  0x16   :  { %1485 = vmatprep.subr.bf16.mxu1 %v1580_v11 }
  0x79   :  { %v1712_v24 = vpop.permute.xlu0 %270 }
  0xdb   :  { %v1704_v18 = vpop.f32.mrb[0].mxu1  ;;  %v1345_v19 = vpop.f32.mrb[0].mxu0 }
  0xdc   :  { %v1706_v20 = vpop.f32.mrb[1].mxu1  ;;  %v140_v21 = vpop.f32.mrb[1].mxu0  ;;  %v146_v49 = vadd.f32 %v1345_v19, %v1719_v28 }
  0xdd   :  { %v141_v29 = vadd.f32 %v1719_v28, %v140_v21  ;;  %v161_v60 = vadd.f32 %v1719_v28, %v1706_v20 }
  0xdf   :  { %v1708_v22 = vpop.f32.mrb[2].mxu1  ;;  %v1348_v3 = vpop.f32.mrb[2].mxu0 }
  0xe0   :  { %v1710_v23 = vpop.f32.mrb[3].mxu1  ;;  %v150_v4 = vpop.f32.mrb[3].mxu0 }
  0xe1   :  { %v151_v10 = vadd.f32 %v1719_v28, %v150_v4 }
  0xe3   :  { %v259_v25 = vpop.f32.mrb[4].mxu1 }
  0xe4   :  { %v273_v26 = vadd.f32 %v1712_v24, %v259_v25  ;;  %v1365_v27 = vpop.f32.mrb[5].mxu1  ;;  %v263_v30 = vadd.f32 %v259_v25, %v141_v29 }
  0xe6   :  { %275 = vrot.lane.b32.xlu0 %v273_v26, %s1581_s11  ;;  %v1251_v31 = vmul.f32 -1.442695, %v263_v30 }
  0xe8   :  { %1530 = vpow2.f32 %v1251_v31 }
  0xf2   :  { %v1531_v32 = vpop.eup %1530 }
  0xf3   :  { %v267_v33 = vadd.f32 1.0, %v1531_v32 }
  0xf5   :  { %1532 = vrcp.f32 %v267_v33 }
  0xff   :  { %v1533_v34 = vpop.eup %1532 }
 0x100   :  { %v285_v40 = vsub.f32 1.0, %v1533_v34  ;;  %v291_v42 = vmul.f32 0.0, %v1533_v34 }
 0x158   :  { %v276_v35 = vpop.permute.xlu0 %275 }
 0x159   :  { %v278_v36 = vmul.f32 %v1533_v34, %v276_v35 }
 0x15b   :  { %280 = vrot.lane.b32.xlu1 %v278_v36, %s1581_s11 }
 0x1cd   :  { %v281_v37 = vpop.permute.xlu1 %280 }
 0x1ce   :  { %v283_v38 = vadd.f32 %v281_v37, %v141_v29 }
 0x1d0   :  { %1534 = vtanh.f32 %v283_v38 }
 0x1da   :  { %v1535_v39 = vpop.eup %1534 }
 0x1db   :  { %287 = vrot.lane.b32.xlu1 %v1535_v39, %s1584_s14  ;;  %v156_v39 = vadd.f32 %v1348_v3, %v1719_v28 }
 0x24d   :  { %v288_v41 = vpop.permute.xlu1 %287 }
 0x24e   :  { %v290_v43 = vmul.f32 %v288_v41, %v285_v40 }
 0x250   :  { %v292_v44 = vadd.f32 %v291_v42, %v290_v43 }
 0x252   :  { %294 = vrot.lane.b32.xlu0 %v292_v44, %s1584_s14 }
 0x2c4   :  { %v1725_v45 = vpop.permute.xlu0 %294 }
 0x2c5   :  { %1375 = vmatmul.mubr.msk.f32.vlgmr.msra.gmra.mrb[6].mxu1 %vm189_vm2, %v1725_v45 }
 0x2c6   :  { %1487 = vmatpush3.bf16.msra.mxu1 %v1657_v8  ;;  %1396 = vmatprep.mubr.msk.f32.mxu1 %vm1582_vm1, %v1583_v17 }
 0x2c7   :  { %1488 = vmatprep.subr.bf16.mxu1 %v1580_v11 }
 0x2ca   :  { %1490 = vmatpush3.bf16.msra.mxu1 %v1685_v16 }
 0x2cb   :  { %1497 = vmatprep.subr.bf16.mxu1 %v1580_v11 }
 0x398   :  { %v364_v46 = vpop.f32.mrb[6].mxu1 }
 0x399   :  { %v375_v47 = vadd.f32 %v364_v46, %v1712_v24  ;;  %v1376_v48 = vpop.f32.mrb[7].mxu1  ;;  %v368_v50 = vadd.f32 %v364_v46, %v146_v49 }
 0x39b   :  { %377 = vrot.lane.b32.xlu1 %v375_v47, %s1581_s11  ;;  %v1253_v51 = vmul.f32 -1.442695, %v368_v50 }
 0x39d   :  { %1536 = vpow2.f32 %v1253_v51 }
 0x3a7   :  { %v1537_v52 = vpop.eup %1536 }
 0x3a8   :  { %v372_v53 = vadd.f32 1.0, %v1537_v52 }
 0x3aa   :  { %1538 = vrcp.f32 %v372_v53 }
 0x3b4   :  { %v1539_v54 = vpop.eup %1538 }
 0x3b5   :  { %v387_v62 = vsub.f32 1.0, %v1539_v54  ;;  %v393_v0 = vmul.f32 %v1539_v54, %v292_v44 }
 0x40d   :  { %v378_v55 = vpop.permute.xlu1 %377 }
 0x40e   :  { %v380_v56 = vmul.f32 %v1539_v54, %v378_v55 }
 0x410   :  { %382 = vrot.lane.b32.xlu0 %v380_v56, %s1581_s11 }
 0x482   :  { %v383_v57 = vpop.permute.xlu0 %382 }
 0x483   :  { %v385_v58 = vadd.f32 %v383_v57, %v146_v49 }
 0x485   :  { %1540 = vtanh.f32 %v385_v58 }
 0x48f   :  { %v1541_v61 = vpop.eup %1540 }
 0x490   :  { %389 = vrot.lane.b32.xlu1 %v1541_v61, %s1584_s14 }
 0x502   :  { %v390_v63 = vpop.permute.xlu1 %389 }
 0x503   :  { %v392_v1 = vmul.f32 %v390_v63, %v387_v62 }
 0x505   :  { %v394_v2 = vadd.f32 %v393_v0, %v392_v1 }
 0x507   :  { %396 = vrot.lane.b32.xlu0 %v394_v2, %s1584_s14 }
 0x579   :  { %v1751_v5 = vpop.permute.xlu0 %396 }
 0x57a   :  { %1386 = vmatmul.mubr.msk.f32.vlgmr.msra.gmra.mrb[4].mxu0 %vm189_vm2, %v1751_v5 }
 0x57b   :  { %1493 = vmatpush3.bf16.msra.mxu0 %v1657_v8  ;;  %1407 = vmatprep.mubr.msk.f32.mxu0 %vm1582_vm1, %v1583_v17 }
 0x57c   :  { %1494 = vmatprep.subr.bf16.mxu0 %v1580_v11 }
 0x57f   :  { %1496 = vmatpush3.bf16.msra.mxu0 %v1685_v16 }
 0x580   :  { %1503 = vmatprep.subr.bf16.mxu0 %v1580_v11 }
 0x64d   :  { %v466_v6 = vpop.f32.mrb[4].mxu0 }
 0x64e   :  { %v477_v7 = vadd.f32 %v466_v6, %v1712_v24  ;;  %v1387_v9 = vpop.f32.mrb[5].mxu0  ;;  %v470_v12 = vadd.f32 %v466_v6, %v151_v10 }
 0x650   :  { %479 = vrot.lane.b32.xlu1 %v477_v7, %s1581_s11  ;;  %v1255_v13 = vmul.f32 -1.442695, %v470_v12 }
 0x652   :  { %1542 = vpow2.f32 %v1255_v13 }
 0x65c   :  { %v1543_v14 = vpop.eup %1542 }
 0x65d   :  { %v474_v15 = vadd.f32 1.0, %v1543_v14 }
 0x65f   :  { %1544 = vrcp.f32 %v474_v15 }
 0x669   :  { %v1545_v19 = vpop.eup %1544 }
 0x66a   :  { %v489_v30 = vsub.f32 1.0, %v1545_v19  ;;  %v495_v32 = vmul.f32 %v1545_v19, %v394_v2 }
 0x6c2   :  { %v480_v21 = vpop.permute.xlu1 %479 }
 0x6c3   :  { %v482_v25 = vmul.f32 %v1545_v19, %v480_v21 }
 0x6c5   :  { %484 = vrot.lane.b32.xlu0 %v482_v25, %s1581_s11  ;;  %v166_v25 = vadd.f32 %v1704_v18, %v1719_v28  ;;  %v1008_v18 = vld [vmem:[%s1952_s5 + $0x8] sm:$0xff] }
 0x737   :  { %v485_v26 = vpop.permute.xlu0 %484 }
 0x738   :  { %v487_v27 = vadd.f32 %v485_v26, %v151_v10 }
 0x73a   :  { %1546 = vtanh.f32 %v487_v27 }
 0x744   :  { %v1547_v29 = vpop.eup %1546 }
 0x745   :  { %491 = vrot.lane.b32.xlu1 %v1547_v29, %s1584_s14 }
 0x7b7   :  { %v492_v31 = vpop.permute.xlu1 %491 }
 0x7b8   :  { %v494_v33 = vmul.f32 %v492_v31, %v489_v30 }
 0x7ba   :  { %v496_v34 = vadd.f32 %v495_v32, %v494_v33  ;;  %v1007_v32 = vld [vmem:[%s1952_s5] sm:$0xff] }
 0x7bb   :  { %v1515_v33 = vpack.c.bf16 %v1008_v18, %v1007_v32 }
 0x7bc   :  { %498 = vrot.lane.b32.xlu0 %v496_v34, %s1584_s14 }
 0x82e   :  { %v1767_v35 = vpop.permute.xlu0 %498 }
 0x82f   :  { %1397 = vmatmul.mubr.msk.f32.vlgmr.msra.gmra.mrb[8].mxu1 %vm189_vm2, %v1767_v35 }
 0x830   :  { %1499 = vmatpush3.bf16.msra.mxu1 %v1657_v8  ;;  %1418 = vmatprep.mubr.msk.f32.mxu1 %vm1582_vm1, %v1583_v17 }
 0x831   :  { %1500 = vmatprep.subr.bf16.mxu1 %v1580_v11 }
 0x834   :  { %1502 = vmatpush3.bf16.msra.mxu1 %v1685_v16 }
 0x835   :  { %1509 = vmatprep.subr.bf16.mxu1 %v1580_v11 }
 0x902   :  { %v568_v36 = vpop.f32.mrb[8].mxu1 }
 0x903   :  { %v579_v37 = vadd.f32 %v568_v36, %v1712_v24  ;;  %v1398_v38 = vpop.f32.mrb[9].mxu1  ;;  %v572_v40 = vadd.f32 %v568_v36, %v156_v39 }
 0x905   :  { %581 = vrot.lane.b32.xlu1 %v579_v37, %s1581_s11  ;;  %v1257_v41 = vmul.f32 -1.442695, %v572_v40 }
 0x907   :  { %1548 = vpow2.f32 %v1257_v41  ;;  %v1009_v41 = vld [vmem:[%s1952_s5 + $0x10] sm:$0xff] }
 0x911   :  { %v1549_v42 = vpop.eup %1548 }
 0x912   :  { %v576_v43 = vadd.f32 1.0, %v1549_v42  ;;  %v1010_v42 = vld [vmem:[%s1952_s5 + $0x18] sm:$0xff] }
 0x914   :  { %1550 = vrcp.f32 %v576_v43  ;;  %v1519_v43 = vpack.c.bf16 %v1010_v42, %v1009_v41 }
 0x91e   :  { %v1551_v44 = vpop.eup %1550 }
 0x91f   :  { %v591_v51 = vsub.f32 1.0, %v1551_v44  ;;  %v597_v53 = vmul.f32 %v1551_v44, %v496_v34 }
 0x977   :  { %v582_v46 = vpop.permute.xlu1 %581 }
 0x978   :  { %v584_v47 = vmul.f32 %v1551_v44, %v582_v46 }
 0x97a   :  { %586 = vrot.lane.b32.xlu0 %v584_v47, %s1581_s11 }
 0x9ec   :  { %v587_v48 = vpop.permute.xlu0 %586 }
 0x9ed   :  { %v589_v49 = vadd.f32 %v587_v48, %v156_v39 }
 0x9ef   :  { %1552 = vtanh.f32 %v589_v49 }
 0x9f9   :  { %v1553_v50 = vpop.eup %1552 }
 0x9fa   :  { %593 = vrot.lane.b32.xlu1 %v1553_v50, %s1584_s14 }
 0xa6c   :  { %v594_v52 = vpop.permute.xlu1 %593 }
 0xa6d   :  { %v596_v54 = vmul.f32 %v594_v52, %v591_v51 }
 0xa6f   :  { %v598_v55 = vadd.f32 %v597_v53, %v596_v54 }
 0xa71   :  { %600 = vrot.lane.b32.xlu0 %v598_v55, %s1584_s14 }
 0xae3   :  { %v1783_v56 = vpop.permute.xlu0 %600 }
 0xae4   :  { %1408 = vmatmul.mubr.msk.f32.vlgmr.msra.gmra.mrb[6].mxu0 %vm189_vm2, %v1783_v56 }
 0xae5   :  { %1505 = vmatpush3.bf16.msra.mxu0 %v1657_v8  ;;  %1429 = vmatprep.mubr.msk.f32.mxu0 %vm1582_vm1, %v1583_v17 }
 0xae6   :  { %1506 = vmatprep.subr.bf16.mxu0 %v1580_v11 }
 0xae9   :  { %1508 = vmatpush3.bf16.msra.mxu0 %v1685_v16 }
 0xaea   :  { %1516 = vmatprep.subr.bf16.mxu0 %v1515_v33 }
 0xbb7   :  { %v670_v57 = vpop.f32.mrb[6].mxu0 }
 0xbb8   :  { %v681_v58 = vadd.f32 %v670_v57, %v1712_v24  ;;  %v1409_v59 = vpop.f32.mrb[7].mxu0  ;;  %v674_v61 = vadd.f32 %v670_v57, %v161_v60 }
 0xbba   :  { %683 = vrot.lane.b32.xlu1 %v681_v58, %s1581_s11  ;;  %v1259_v62 = vmul.f32 -1.442695, %v674_v61 }
 0xbbc   :  { %1554 = vpow2.f32 %v1259_v62 }
 0xbc6   :  { %v1555_v63 = vpop.eup %1554 }
 0xbc7   :  { %v678_v0 = vadd.f32 1.0, %v1555_v63 }
 0xbc9   :  { %1556 = vrcp.f32 %v678_v0 }
 0xbd3   :  { %v1557_v1 = vpop.eup %1556 }
 0xbd4   :  { %v693_v9 = vsub.f32 1.0, %v1557_v1  ;;  %v699_v20 = vmul.f32 %v1557_v1, %v598_v55 }
 0xc2c   :  { %v684_v2 = vpop.permute.xlu1 %683 }
 0xc2d   :  { %v686_v3 = vmul.f32 %v1557_v1, %v684_v2 }
 0xc2f   :  { %688 = vrot.lane.b32.xlu0 %v686_v3, %s1581_s11 }
 0xca1   :  { %v689_v4 = vpop.permute.xlu0 %688 }
 0xca2   :  { %v691_v6 = vadd.f32 %v689_v4, %v161_v60 }
 0xca4   :  { %1558 = vtanh.f32 %v691_v6 }
 0xcae   :  { %v1559_v7 = vpop.eup %1558 }
 0xcaf   :  { %695 = vrot.lane.b32.xlu1 %v1559_v7, %s1584_s14  ;;  %v171_v7 = vadd.f32 %v1719_v28, %v1710_v23 }
 0xd21   :  { %v696_v10 = vpop.permute.xlu1 %695 }
 0xd22   :  { %v698_v12 = vmul.f32 %v696_v10, %v693_v9 }
 0xd24   :  { %v700_v13 = vadd.f32 %v699_v20, %v698_v12 }
 0xd26   :  { %702 = vrot.lane.b32.xlu0 %v700_v13, %s1584_s14 }
 0xd98   :  { %v703_v14 = vpop.permute.xlu0 %702 }
 0xd99   :  { %1419 = vmatmul.mubr.msk.f32.vlgmr.msra.gmra.mrb[10].mxu1 %vm189_vm2, %v703_v14 }
 0xd9a   :  { %1511 = vmatpush3.bf16.msra.mxu1 %v1657_v8  ;;  %1440 = vmatprep.mubr.msk.f32.mxu1 %vm1582_vm1, %v1583_v17 }
 0xd9b   :  { %1512 = vmatprep.subr.bf16.mxu1 %v1580_v11 }
 0xd9e   :  { %1514 = vmatpush3.bf16.msra.mxu1 %v1685_v16 }
 0xe6c   :  { %v772_v15 = vpop.f32.mrb[10].mxu1 }
 0xe6d   :  { %v783_v19 = vadd.f32 %v772_v15, %v1712_v24  ;;  %v1420_v21 = vpop.f32.mrb[11].mxu1  ;;  %v776_v26 = vadd.f32 %v772_v15, %v166_v25 }
 0xe6f   :  { %785 = vrot.lane.b32.xlu1 %v783_v19, %s1581_s11  ;;  %v1261_v27 = vmul.f32 -1.442695, %v776_v26 }
 0xe71   :  { %1560 = vpow2.f32 %v1261_v27 }
 0xe7b   :  { %v1561_v8 = vpop.eup %1560 }
 0xe7c   :  { %v780_v29 = vadd.f32 1.0, %v1561_v8 }
 0xe7e   :  { %1562 = vrcp.f32 %v780_v29 }
 0xe88   :  { %v1563_v17 = vpop.eup %1562 }
 0xe89   :  { %v795_v36 = vsub.f32 1.0, %v1563_v17  ;;  %v801_v38 = vmul.f32 %v1563_v17, %v700_v13 }
 0xee1   :  { %v786_v30 = vpop.permute.xlu1 %785 }
 0xee2   :  { %v788_v11 = vmul.f32 %v1563_v17, %v786_v30 }
 0xee4   :  { %790 = vrot.lane.b32.xlu0 %v788_v11, %s1581_s11 }
 0xf56   :  { %v791_v16 = vpop.permute.xlu0 %790 }
 0xf57   :  { %v793_v31 = vadd.f32 %v791_v16, %v166_v25 }
 0xf59   :  { %1564 = vtanh.f32 %v793_v31  ;;  %v176_v31 = vadd.f32 %v1708_v22, %v1719_v28 }
 0xf63   :  { %v1565_v34 = vpop.eup %1564 }
 0xf64   :  { %797 = vrot.lane.b32.xlu1 %v1565_v34, %s1584_s14 }
 0xfd6   :  { %v798_v37 = vpop.permute.xlu1 %797 }
 0xfd7   :  { %v800_v39 = vmul.f32 %v798_v37, %v795_v36 }
 0xfd9   :  { %v1817_v40 = vadd.f32 %v801_v38, %v800_v39 }
 0xfdb   :  { %804 = vrot.lane.b32.xlu0 %v1817_v40, %s1584_s14 }
0x104d   :  { %v805_v44 = vpop.permute.xlu0 %804 }
0x104e   :  { %1430 = vmatmul.mubr.msk.f32.vlgmr.msra.gmra.mrb[8].mxu0 %vm189_vm2, %v805_v44 }
0x104f   :  { %1518 = vmatpush3.bf16.msra.mxu0 %v1515_v33  ;;  %1451 = vmatprep.mubr.msk.f32.mxu0 %vm189_vm2, %v1725_v45  ;;  %v1843_v45 = vld [vmem:[%s1953_s6] ss:$0 sm:$0xff] }
0x1050   :  { %1520 = vmatprep.subr.bf16.mxu0 %v1519_v43 }
0x1053   :  { %1522 = vmatpush3.bf16.msra.mxu0 %v1519_v43 }
0x1056   :  { %1452 = vmatmul.mubr.msk.f32.vlgmr.msra.gmra.mrb[10].mxu0 %vm189_vm2, %v1751_v5 }
0x1057   :  { %1454 = vmatprep.mubr.msk.f32.mxu0 %vm189_vm2, %v1767_v35 }
0x105a   :  { %1455 = vmatmul.mubr.msk.f32.gmra.mrb[12].mxu0 %vm189_vm2, %v1783_v56 }
0x105b   :  { %1457 = vmatprep.mubr.msk.f32.mxu0 %vm189_vm2, %v703_v14 }
0x105e   :  { %1458 = vmatmul.mubr.msk.f32.gmra.mrb[14].mxu0 %vm189_vm2, %v805_v44 }
0x1121   :  { %v874_v46 = vpop.f32.mrb[8].mxu0 }
0x1122   :  { %v885_v47 = vadd.f32 %v874_v46, %v1712_v24  ;;  %v1431_v48 = vpop.f32.mrb[9].mxu0  ;;  %v878_v9 = vadd.f32 %v874_v46, %v171_v7 }
0x1124   :  { %887 = vrot.lane.b32.xlu1 %v885_v47, %s1581_s11  ;;  %v1263_v10 = vmul.f32 -1.442695, %v878_v9 }
0x1126   :  { %1566 = vpow2.f32 %v1263_v10 }
0x1129   :  { %v1453_v5 = vpop.f32.mrb[10].mxu0 }
0x112a   :  { %v1846_v35 = vadd.f32 %v1453_v5, %v1843_v45  ;;  %v1089_v49 = vpop.f32.mrb[11].mxu0 }
0x112b   :  { %v1849_v50 = vadd.f32 %v1843_v45, %v1089_v49 }
0x112c   :  { %v1129_v51 = vsel %vm49_vm0, %v1846_v35, 0.0 }
0x112d   :  { %v1128_v52 = vsel %vm49_vm0, %v1849_v50, 0.0  ;;  %v1456_v53 = vpop.f32.mrb[12].mxu0 }
0x112e   :  { %v1130_v54 = vadd.f32 %v1129_v51, %v1128_v52  ;;  %v1099_v55 = vpop.f32.mrb[13].mxu0  ;;  %v1856_v56 = vadd.f32 %v1456_v53, %v1843_v45 }
0x112f   :  { %v1859_v57 = vadd.f32 %v1843_v45, %v1099_v55 }
0x1130   :  { %v1133_v62 = vsel %vm49_vm0, %v1856_v56, 0.0  ;;  %v1567_v20 = vpop.eup %1566 }
0x1131   :  { %v1131_v58 = vsel %vm49_vm0, %v1859_v57, 0.0  ;;  %v1459_v59 = vpop.f32.mrb[14].mxu0  ;;  %v882_v12 = vadd.f32 1.0, %v1567_v20 }
0x1132   :  { %v1132_v60 = vadd.f32 %v1131_v58, %v1130_v54  ;;  %v1109_v61 = vpop.f32.mrb[15].mxu0  ;;  %v1866_v63 = vadd.f32 %v1459_v59, %v1843_v45 }
0x1133   :  { %v1869_v0 = vadd.f32 %v1843_v45, %v1109_v61  ;;  %1568 = vrcp.f32 %v882_v12 }
0x1134   :  { %v1134_v1 = vadd.f32 %v1133_v62, %v1132_v60  ;;  %v1137_v4 = vsel %vm49_vm0, %v1866_v63, 0.0 }
0x1135   :  { %v1135_v2 = vsel %vm49_vm0, %v1869_v0, 0.0 }
0x1136   :  { %v1136_v3 = vadd.f32 %v1135_v2, %v1134_v1 }
0x1138   :  { %v1138_v6 = vadd.f32 %v1137_v4, %v1136_v3 }
0x113d   :  { %v1569_v13 = vpop.eup %1568 }
0x113e   :  { %v897_v26 = vsub.f32 1.0, %v1569_v13  ;;  %v903_v23 = vmul.f32 %v1569_v13, %v1817_v40 }
0x1196   :  { %v888_v14 = vpop.permute.xlu1 %887 }
0x1197   :  { %v890_v15 = vmul.f32 %v1569_v13, %v888_v14 }
0x1199   :  { %892 = vrot.lane.b32.xlu0 %v890_v15, %s1581_s11 }
0x120b   :  { %v893_v19 = vpop.permute.xlu0 %892 }
0x120c   :  { %v895_v21 = vadd.f32 %v893_v19, %v171_v7 }
0x120e   :  { %1570 = vtanh.f32 %v895_v21 }
0x1218   :  { %v1571_v25 = vpop.eup %1570 }
0x1219   :  { %899 = vrot.lane.b32.xlu1 %v1571_v25, %s1584_s14 }
0x128b   :  { %v900_v27 = vpop.permute.xlu1 %899 }
0x128c   :  { %v902_v8 = vmul.f32 %v900_v27, %v897_v26 }
0x128e   :  { %v904_v29 = vadd.f32 %v903_v23, %v902_v8 }
0x1290   :  { %906 = vrot.lane.b32.xlu0 %v904_v29, %s1584_s14 }
0x1302   :  { %v907_v17 = vpop.permute.xlu0 %906 }
0x1303   :  { %1441 = vmatmul.mubr.msk.f32.vlgmr.msra.gmra.mrb[12].mxu1 %vm189_vm2, %v907_v17  ;;  %1460 = vmatprep.mubr.msk.f32.mxu0 %vm189_vm2, %v907_v17 }
0x13d6   :  { %v976_v30 = vpop.f32.mrb[12].mxu1 }
0x13d7   :  { %v987_v11 = vadd.f32 %v976_v30, %v1712_v24  ;;  %v1442_v16 = vpop.f32.mrb[13].mxu1  ;;  %v980_v32 = vadd.f32 %v976_v30, %v176_v31 }
0x13d9   :  { %989 = vrot.lane.b32.xlu1 %v987_v11, %s1581_s11  ;;  %v1265_v18 = vmul.f32 -1.442695, %v980_v32 }
0x13db   :  { %1572 = vpow2.f32 %v1265_v18 }
0x13e5   :  { %v1573_v33 = vpop.eup %1572 }
0x13e6   :  { %v984_v34 = vadd.f32 1.0, %v1573_v33 }
0x13e8   :  { %1574 = vrcp.f32 %v984_v34 }
0x13f2   :  { %v1575_v36 = vpop.eup %1574 }
0x13f3   :  { %v999_v41 = vsub.f32 1.0, %v1575_v36  ;;  %v1005_v22 = vmul.f32 %v1575_v36, %v904_v29 }
0x144b   :  { %v990_v37 = vpop.permute.xlu1 %989 }
0x144c   :  { %v992_v38 = vmul.f32 %v1575_v36, %v990_v37 }
0x144e   :  { %994 = vrot.lane.b32.xlu0 %v992_v38, %s1581_s11 }
0x14c0   :  { %v995_v39 = vpop.permute.xlu0 %994 }
0x14c1   :  { %v997_v40 = vadd.f32 %v995_v39, %v176_v31  ;;  %v1275_v39 = vld [vmem:[%s1954_s7] ss:$0 sm:$0xff] }
0x14c3   :  { %1576 = vtanh.f32 %v997_v40 }
0x14cd   :  { %v1577_v24 = vpop.eup %1576 }
0x14ce   :  { %1001 = vrot.lane.b32.xlu1 %v1577_v24, %s1584_s14 }
0x1540   :  { %v1002_v42 = vpop.permute.xlu1 %1001 }
0x1541   :  { %v1004_v28 = vmul.f32 %v1002_v42, %v999_v41 }
0x1543   :  { %v1006_v43 = vadd.f32 %v1005_v22, %v1004_v28 }
0x1545   :  { %1019 = vrot.lane.b32.xlu0 %v1006_v43, %s1584_s14 }
0x15b7   :  { %v1020_v44 = vpop.permute.xlu0 %1019 }
0x15b8   :  { %1461 = vmatmul.mubr.msk.f32.gmra.mrb[16].mxu0 %vm189_vm2, %v1020_v44 }
0x168b   :  { %v1462_v46 = vpop.f32.mrb[16].mxu0 }
0x168c   :  { %v1119_v47 = vpop.f32.mrb[17].mxu0  ;;  %v1125_v48 = vadd.f32 %v1462_v46, %v1843_v45  ;;  %v1276_v46 = vld [vmem:[%s1955_s8] ss:$0 sm:$0xff] }
0x168d   :  { %v1120_v5 = vadd.f32 %v1843_v45, %v1119_v47 }
0x168e   :  { %v1141_v52 = vsel %vm49_vm0, %v1125_v48, 0.0 }
0x168f   :  { %v1139_v49 = vsel %vm49_vm0, %v1120_v5, 0.0 }
0x1690   :  { %v1140_v51 = vadd.f32 %v1139_v49, %v1138_v6 }
0x1692   :  { %v1142_v53 = vadd.f32 %v1141_v52, %v1140_v51 }
0x1694   :  { %v1143_v54 = vrot.slane %v1142_v53, 4 }
0x1696   :  { %v1144_v55 = vadd.f32 %v1143_v54, %v1142_v53 }
0x1698   :  { %v1145_v58 = vrot.slane %v1144_v55, 2 }
0x169a   :  { %v1146_v59 = vadd.f32 %v1145_v58, %v1144_v55 }
0x169c   :  { %v1147_v60 = vrot.slane %v1146_v59, 1 }
0x169e   :  { %v1148_v61 = vadd.f32 %v1147_v60, %v1146_v59 }
0x16a0   :  { %v1150_v62 = vmul.f32 0.015625, %v1148_v61 }
0x16a2   :  { %v1151_v1 = vsub.f32 %v1849_v50, %v1150_v62  ;;  %v1152_v2 = vsub.f32 %v1846_v35, %v1150_v62  ;;  %v1153_v3 = vsub.f32 %v1859_v57, %v1150_v62  ;;  %v1154_v45 = vsub.f32 %v1856_v56, %v1150_v62 }
0x16a3   :  { %v1155_v4 = vsub.f32 %v1869_v0, %v1150_v62  ;;  %v1156_v6 = vsub.f32 %v1866_v63, %v1150_v62  ;;  %v1157_v7 = vsub.f32 %v1120_v5, %v1150_v62  ;;  %v1158_v9 = vsub.f32 %v1125_v48, %v1150_v62 }
0x16a4   :  { %v1159_v10 = vmul.f32 %v1151_v1, %v1151_v1  ;;  %v1160_v20 = vmul.f32 %v1152_v2, %v1152_v2  ;;  %v1161_v12 = vmul.f32 %v1153_v3, %v1153_v3  ;;  %v1162_v13 = vmul.f32 %v1154_v45, %v1154_v45 }
0x16a5   :  { %v1163_v35 = vmul.f32 %v1155_v4, %v1155_v4  ;;  %v1164_v56 = vmul.f32 %v1156_v6, %v1156_v6  ;;  %v1165_v63 = vmul.f32 %v1157_v7, %v1157_v7  ;;  %v1166_v27 = vmul.f32 %v1158_v9, %v1158_v9 }
0x16a6   :  { %v1167_v14 = vsel %vm49_vm0, %v1159_v10, 0.0  ;;  %v1168_v50 = vsel %vm49_vm0, %v1160_v20, 0.0  ;;  %v1170_v57 = vsel %vm49_vm0, %v1161_v12, 0.0  ;;  %v1172_v0 = vsel %vm49_vm0, %v1162_v13, 0.0 }
0x16a7   :  { %v1169_v15 = vadd.f32 %v1168_v50, %v1167_v14  ;;  %v1174_v25 = vsel %vm49_vm0, %v1163_v35, 0.0  ;;  %v1176_v23 = vsel %vm49_vm0, %v1164_v56, 0.0  ;;  %v1178_v29 = vsel %vm49_vm0, %v1165_v63, 0.0 }
0x16a8   :  { %v1180_v30 = vsel %vm49_vm0, %v1166_v27, 0.0 }
0x16a9   :  { %v1171_v19 = vadd.f32 %v1170_v57, %v1169_v15 }
0x16ab   :  { %v1173_v21 = vadd.f32 %v1172_v0, %v1171_v19 }
0x16ad   :  { %v1175_v26 = vadd.f32 %v1174_v25, %v1173_v21 }
0x16af   :  { %v1177_v8 = vadd.f32 %v1176_v23, %v1175_v26 }
0x16b1   :  { %v1179_v17 = vadd.f32 %v1178_v29, %v1177_v8 }
0x16b3   :  { %v1181_v11 = vadd.f32 %v1180_v30, %v1179_v17 }
0x16b5   :  { %v1182_v16 = vrot.slane %v1181_v11, 4 }
0x16b7   :  { %v1183_v31 = vadd.f32 %v1182_v16, %v1181_v11 }
0x16b9   :  { %v1184_v32 = vrot.slane %v1183_v31, 2 }
0x16bb   :  { %v1185_v18 = vadd.f32 %v1184_v32, %v1183_v31 }
0x16bd   :  { %v1186_v33 = vrot.slane %v1185_v18, 1 }
0x16bf   :  { %v1187_v34 = vadd.f32 %v1186_v33, %v1185_v18 }
0x16c1   :  { %v1188_v36 = vmul.f32 0.015625, %v1187_v34 }
0x16c3   :  { %v1189_v37 = vadd.f32 1e-05, %v1188_v36 }
0x16c5   :  { %1578 = vrsqrt.f32 %v1189_v37 }
0x16cf   :  { %v1579_v38 = vpop.eup %1578 }
0x16d0   :  { %v1192_v40 = vmul.f32 %v1579_v38, %v1151_v1  ;;  %v1193_v24 = vmul.f32 %v1579_v38, %v1152_v2  ;;  %v1194_v41 = vmul.f32 %v1579_v38, %v1153_v3  ;;  %v1195_v42 = vmul.f32 %v1579_v38, %v1154_v45 }
0x16d1   :  { %v1196_v22 = vmul.f32 %v1579_v38, %v1155_v4  ;;  %v1197_v28 = vmul.f32 %v1579_v38, %v1156_v6  ;;  %v1198_v43 = vmul.f32 %v1579_v38, %v1157_v7  ;;  %v1199_v44 = vmul.f32 %v1579_v38, %v1158_v9 }
0x16d2   :  { %v1206_v47 = vmul.f32 %v1275_v39, %v1192_v40  ;;  %v1207_v48 = vmul.f32 %v1275_v39, %v1193_v24  ;;  %v1208_v5 = vmul.f32 %v1275_v39, %v1194_v41  ;;  %v1209_v49 = vmul.f32 %v1275_v39, %v1195_v42 }
0x16d3   :  { %v1210_v51 = vmul.f32 %v1275_v39, %v1196_v22  ;;  %v1211_v52 = vmul.f32 %v1275_v39, %v1197_v28  ;;  %v1212_v53 = vmul.f32 %v1275_v39, %v1198_v43  ;;  %v1213_v54 = vmul.f32 %v1275_v39, %v1199_v44 }
0x16d4   :  { %v1221_v55 = vadd.f32 %v1276_v46, %v1206_v47  ;;  %v1222_v58 = vadd.f32 %v1276_v46, %v1207_v48  ;;  %v1223_v59 = vadd.f32 %v1276_v46, %v1208_v5  ;;  %v1224_v60 = vadd.f32 %v1276_v46, %v1209_v49 }
0x16d5   :  { %v1225_v61 = vadd.f32 %v1276_v46, %v1210_v51  ;;  %v1226_v62 = vadd.f32 %v1276_v46, %v1211_v52  ;;  %v1227_v1 = vadd.f32 %v1276_v46, %v1212_v53  ;;  %v1228_v2 = vadd.f32 %v1276_v46, %v1213_v54 }
0x16d6   :  { %1229 = vst.msk [vmem:[%s1956_s9] sm:$0xff] %vm49_vm0, %v1221_v55  ;;  %1230 = vst.msk [vmem:[%s1956_s9 + $0x8] sm:$0xff] %vm49_vm0, %v1222_v58 }
0x16d7   :  { %1231 = vst.msk [vmem:[%s1956_s9 + $0x10] sm:$0xff] %vm49_vm0, %v1223_v59  ;;  %1232 = vst.msk [vmem:[%s1956_s9 + $0x18] sm:$0xff] %vm49_vm0, %v1224_v60 }
0x16d8   :  { %1233 = vst.msk [vmem:[%s1956_s9 + $0x20] sm:$0xff] %vm49_vm0, %v1225_v61  ;;  %1234 = vst.msk [vmem:[%s1956_s9 + $0x28] sm:$0xff] %vm49_vm0, %v1226_v62 }
0x16d9   :  { %1235 = vst.msk [vmem:[%s1956_s9 + $0x30] sm:$0xff] %vm49_vm0, %v1227_v1  ;;  %1236 = vst.msk [vmem:[%s1956_s9 + $0x38] sm:$0xff] %vm49_vm0, %v1228_v2 }

</bundles_post_ra>
